<compile_context>
chip_gen: v6e
topology: v6e:2x2x1
jax: 0.10.0
libtpu: 0.0.40
codegen_flags: <defaults>
</compile_context>

<pallas_src>
import functools

import jax
import jax.numpy as jnp
import numpy as np
from jax.experimental import pallas as pl
from jax.experimental.pallas import tpu as pltpu


def _mp_fused_kernel(*refs, iters, input_ncs, csum_pad):
    # refs layout: alpha, x_0..x_{B-1}, W, b, out_0..out_{B-1}
    #   x_i/out_i : (Ci, TP)            channels-first pixel tile (lane-dense)
    #   W         : (Csum_pad, Csum_pad) block matrix; W[rows_i, cols_j] = W_{j->i}
    #   b         : (Csum_pad, 1)        per-output-channel summed biases
    #   alpha     : (1, 1) SMEM          shared PReLU parameter
    branch_n = len(input_ncs)
    alpha_ref = refs[0]
    x_refs = refs[1:1 + branch_n]
    w_ref = refs[1 + branch_n]
    b_ref = refs[2 + branch_n]
    out_refs = refs[3 + branch_n:3 + 2 * branch_n]

    a = alpha_ref[0, 0]
    w = w_ref[...]

    # Assemble the channels-first (Csum_pad, TP) slab in VMEM (no HBM concat).
    parts = [r[...].astype(jnp.float32) for r in x_refs]
    csum = sum(input_ncs)
    tp = parts[0].shape[-1]
    if csum_pad > csum:
        parts.append(jnp.zeros((csum_pad - csum, tp), jnp.float32))
    x = jnp.concatenate(parts, axis=0) if len(parts) > 1 else parts[0]

    # Hoist the (Csum,1)->(Csum,TP) bias broadcast out of the unrolled loop
    # (JAX does not CSE broadcast_in_dim).
    bb = jnp.broadcast_to(b_ref[...].astype(jnp.float32), x.shape)

    for _ in range(iters):  # short static loop, unrolled; state stays in VMEM
        binary = jnp.dot(w, x.astype(w.dtype), preferred_element_type=jnp.float32) + bb
        binary = jnp.where(binary > 0, binary, a * binary)   # shared PReLU
        x = jnp.maximum(x + binary, 0.0)                     # ReLU(unary + binary)

    # Per-branch outputs written straight from VMEM (no wrapper channel slice).
    off = 0
    for i, c in enumerate(input_ncs):
        out_refs[i][...] = x[off:off + c, :].astype(out_refs[i].dtype)
        off += c


def _round_up(x, m):
    return ((x + m - 1) // m) * m


def _vmem_budget():
    """(tile-fit budget bytes, vmem_limit_bytes) chosen per TPU generation."""
    cap = None
    try:
        info = pltpu.get_tpu_info()
        cap = int(getattr(info, "vmem_capacity_bytes", 0)) or None
    except Exception:
        cap = None
    if cap is None:
        cap = 64 << 20                  # conservative default (v7x-sized VMEM)
    if cap >= (100 << 20):              # v5e / v6e: 128 MiB physical VMEM
        return 48 << 20, 64 << 20
    return 24 << 20, 32 << 20           # v7x: 64 MiB physical, keep headroom


def _choose_tile_p(hw, csum_pad, n_batch, *, dtype_bytes=4, max_tile=65536,
                   vmem_budget_bytes=24 << 20, min_grid_steps=4):
    """Largest 128-multiple pixel tile whose blocks + in-kernel temporaries fit
    the VMEM budget, while keeping >= min_grid_steps grid steps so both v7x
    TensorCores stay busy (harmless on 1-TC v5e/v6e)."""
    tile = max(128, min(max_tile, _round_up(hw, 128)))

    if n_batch < min_grid_steps:
        need_tiles = -(-min_grid_steps // max(1, n_batch))   # ceil
        cap = (hw // need_tiles) // 128 * 128
        if cap >= 128:
            tile = min(tile, cap)

    def fits(t):
        io = 2 * 2 * csum_pad * t * dtype_bytes        # branch ins + outs, double-buffered
        temps = 4 * csum_pad * t * 4                   # x(f32), binary, bias-bcast, concat copy
        resident = 2 * csum_pad * (csum_pad + 1) * 4   # weight + bias (double-buffered)
        return io + temps + resident <= vmem_budget_bytes

    while tile > 128 and not fits(tile):
        tile = max(128, ((tile // 2) // 128) * 128)
    return tile


def _pack_block_params(params, branch_n, input_ncs, csum_pad, w_dtype):
    """Build the (Csum_pad, Csum_pad) block weight (zero diagonal / padding
    blocks) and (Csum_pad, 1) per-output-channel summed bias."""
    offs = np.concatenate([[0], np.cumsum(np.asarray(input_ncs))]).astype(int)
    wbig = np.zeros((csum_pad, csum_pad), np.float32)
    bbig = np.zeros((csum_pad,), np.float32)
    for i in range(branch_n):
        ri = slice(int(offs[i]), int(offs[i + 1]))
        for j in range(branch_n):
            if i == j:
                continue
            w, b = params[(j, i)]                       # w: (Ci, Cj), b: (Ci,)
            wbig[ri, int(offs[j]):int(offs[j + 1])] = np.asarray(w, np.float32)
            bbig[ri] += np.asarray(b, np.float32)
    return jnp.asarray(wbig, w_dtype), jnp.asarray(bbig.reshape(csum_pad, 1), jnp.float32)


def init_message_passing_params(key, branch_n, input_ncs):
    """Deterministic init mimicking PyTorch _ConvNd defaults for 1x1 convs."""
    params = {}
    for i in range(branch_n):
        for j in range(branch_n):
            if i == j:
                continue
            cin, cout = input_ncs[j], input_ncs[i]
            key, kw, kb = jax.random.split(key, 3)
            bound = 1.0 / np.sqrt(cin)  # kaiming_uniform(a=sqrt(5)) + bias bound
            w = jax.random.uniform(kw, (cout, cin), jnp.float32, -bound, bound)
            b = jax.random.uniform(kb, (cout,), jnp.float32, -bound, bound)
            params[(j, i)] = (w, b)
    params["prelu_alpha"] = jnp.array([[0.25]], jnp.float32)  # nn.PReLU() default
    return params


def message_passing_forward(inputs, params, *, iters=2, tile_p=None, matmul_dtype=None):
    """inputs: list of NCHW arrays (one per branch, same N, H, W)."""
    branch_n = len(inputs)
    N, _, H, W = inputs[0].shape
    HW = H * W
    input_ncs = [int(v.shape[1]) for v in inputs]
    csum = int(sum(input_ncs))
    csum_pad = _round_up(csum, 8)

    # bf16 MXU operands only pay off at realistic channel sums (hundreds);
    # keep f32 at tiny sizes so results match the f32 reference tightly.
    if matmul_dtype is None:
        matmul_dtype = jnp.bfloat16 if csum_pad >= 256 else jnp.float32

    wbig, bbig = _pack_block_params(params, branch_n, input_ncs, csum_pad, matmul_dtype)
    alpha = params["prelu_alpha"]

    # NCHW -> (N, Ci, H*W) per branch: pure reshape, no transpose, no HBM concat.
    flats = [v.reshape(N, c, HW) for v, c in zip(inputs, input_ncs)]

    vmem_budget, vmem_limit = _vmem_budget()
    if tile_p is None:
        tile_p = _choose_tile_p(
            HW, csum_pad, N,
            dtype_bytes=jnp.dtype(flats[0].dtype).itemsize,
            vmem_budget_bytes=vmem_budget)
    n_tiles = pl.cdiv(HW, tile_p)

    in_specs = [pl.BlockSpec(memory_space=pltpu.MemorySpace.SMEM)]        # PReLU alpha (1,1)
    for c in input_ncs:                                                   # per-branch hidden state
        in_specs.append(pl.BlockSpec((None, c, tile_p), lambda n, p: (n, 0, p)))
    in_specs.append(pl.BlockSpec((csum_pad, csum_pad), lambda n, p: (0, 0)))  # block weight (resident)
    in_specs.append(pl.BlockSpec((csum_pad, 1), lambda n, p: (0, 0)))         # summed bias

    out_shape = tuple(
        jax.ShapeDtypeStruct((N, c, HW), v.dtype) for v, c in zip(inputs, input_ncs))
    out_specs = tuple(
        pl.BlockSpec((None, c, tile_p), lambda n, p: (n, 0, p)) for c in input_ncs)

    kernel = functools.partial(
        _mp_fused_kernel, iters=iters, input_ncs=tuple(input_ncs), csum_pad=csum_pad)

    outs = pl.pallas_call(
        kernel,
        out_shape=out_shape,
        grid=(N, n_tiles),
        in_specs=in_specs,
        out_specs=out_specs,
        compiler_params=pltpu.CompilerParams(
            dimension_semantics=("parallel", "parallel"),
            vmem_limit_bytes=vmem_limit),
    )(alpha, *flats, wbig, bbig)

    # Per-branch NCHW outputs (reshape only; channel split was done in-kernel).
    return [o.reshape(N, c, H, W) for o, c in zip(outs, input_ncs)]


def message_passing_ref(inputs, params, *, iters=2):
    """Pure-JAX reference matching the PyTorch MessagePassing.forward (NCHW)."""
    branch_n = len(inputs)
    hs = list(inputs)
    alpha = params["prelu_alpha"][0, 0]
    for _ in range(iters):
        new = []
        for i in range(branch_n):
            binary = None
            for j in range(branch_n):
                if i == j:
                    continue
                w, b = params[(j, i)]
                y = jnp.einsum("oc,nchw->nohw", w, hs[j]) + b[None, :, None, None]
                binary = y if binary is None else binary + y
            binary = jnp.where(binary > 0, binary, alpha * binary)
            new.append(jnp.maximum(hs[i] + binary, 0.0))
        hs = new
    return hs


if __name__ == "__main__":
    # Test 1: 3-branch MessagePassing (CRFVGG.passing2-like, scaled-down channels).
    branch_n = 3
    input_ncs = (8, 16, 8)
    N, H, W = 2, 16, 16

    key = jax.random.PRNGKey(0)
    key, *ikeys = jax.random.split(key, branch_n + 1)
    inputs = [jax.random.normal(ikeys[i], (N, input_ncs[i], H, W), jnp.float32)
              for i in range(branch_n)]
    params = init_message_passing_params(key, branch_n, input_ncs)

    outs = jax.block_until_ready(message_passing_forward(inputs, params))
    refs = message_passing_ref(inputs, params)
    for o, r in zip(outs, refs):
        np.testing.assert_allclose(np.asarray(o), np.asarray(r), rtol=1e-5, atol=1e-5)

    # Test 2: 2-branch MessagePassing with a ragged spatial size (H*W % 128 != 0),
    # exercising the cdiv grid + padded tail path.
    branch_n2 = 2
    input_ncs2 = (16, 8)
    N2, H2, W2 = 1, 10, 10
    key2 = jax.random.PRNGKey(1)
    key2, *ikeys2 = jax.random.split(key2, branch_n2 + 1)
    inputs2 = [jax.random.normal(ikeys2[i], (N2, input_ncs2[i], H2, W2), jnp.float32)
               for i in range(branch_n2)]
    params2 = init_message_passing_params(key2, branch_n2, input_ncs2)

    outs2 = jax.block_until_ready(message_passing_forward(inputs2, params2))
    refs2 = message_passing_ref(inputs2, params2)
    for o, r in zip(outs2, refs2):
        np.testing.assert_allclose(np.asarray(o), np.asarray(r), rtol=1e-5, atol=1e-5)

    print("KERNEL_OK")
</pallas_src>

<mosaic_0001>
module attributes {stable_mosaic.version = 11 : i64} {
  func.func @_mp_fused_kernel(%arg0: i32, %arg1: i32, %arg2: memref<1x1xf32, #tpu.memory_space<smem>>, %arg3: memref<1x8x128xf32, #tpu.memory_space<vmem>>, %arg4: memref<1x16x128xf32, #tpu.memory_space<vmem>>, %arg5: memref<1x8x128xf32, #tpu.memory_space<vmem>>, %arg6: memref<32x32xf32, #tpu.memory_space<vmem>>, %arg7: memref<32x1xf32, #tpu.memory_space<vmem>>, %arg8: memref<1x8x128xf32, #tpu.memory_space<vmem>>, %arg9: memref<1x16x128xf32, #tpu.memory_space<vmem>>, %arg10: memref<1x8x128xf32, #tpu.memory_space<vmem>>) attributes {dimension_semantics = [#tpu.dimension_semantics<parallel>, #tpu.dimension_semantics<parallel>], iteration_bounds = array<i64: 2, 2>, scalar_prefetch = 0 : i64, scratch_operands = 0 : i64, tpu.core_type = #tpu.core_type<tc>, window_params = [{transform_indices = @transform_0, window_bounds = array<i64: 1, 1>}, {transform_indices = @transform_1, window_bounds = array<i64: 1, 8, 128>}, {transform_indices = @transform_2, window_bounds = array<i64: 1, 16, 128>}, {transform_indices = @transform_3, window_bounds = array<i64: 1, 8, 128>}, {pipeline_mode = #tpu.pipeline_mode<synchronous>, transform_indices = @transform_4, window_bounds = array<i64: 32, 32>}, {pipeline_mode = #tpu.pipeline_mode<synchronous>, transform_indices = @transform_5, window_bounds = array<i64: 32, 1>}, {transform_indices = @transform_6, window_bounds = array<i64: 1, 8, 128>}, {transform_indices = @transform_7, window_bounds = array<i64: 1, 16, 128>}, {transform_indices = @transform_8, window_bounds = array<i64: 1, 8, 128>}]} {
    %c0 = arith.constant 0 : index
    %c0_0 = arith.constant 0 : index
    %0 = memref.load %arg2[%c0, %c0_0] : memref<1x1xf32, #tpu.memory_space<smem>>
    %c0_1 = arith.constant 0 : index
    %c0_2 = arith.constant 0 : index
    %1 = vector.load %arg6[%c0_1, %c0_2] : memref<32x32xf32, #tpu.memory_space<vmem>>, vector<32x32xf32>
    %c0_3 = arith.constant 0 : index
    %c0_4 = arith.constant 0 : index
    %c0_5 = arith.constant 0 : index
    %2 = vector.load %arg3[%c0_3, %c0_4, %c0_5] : memref<1x8x128xf32, #tpu.memory_space<vmem>>, vector<1x8x128xf32>
    %3 = vector.shape_cast %2 : vector<1x8x128xf32> to vector<8x128xf32>
    %c0_6 = arith.constant 0 : index
    %c0_7 = arith.constant 0 : index
    %c0_8 = arith.constant 0 : index
    %4 = vector.load %arg4[%c0_6, %c0_7, %c0_8] : memref<1x16x128xf32, #tpu.memory_space<vmem>>, vector<1x16x128xf32>
    %5 = vector.shape_cast %4 : vector<1x16x128xf32> to vector<16x128xf32>
    %c0_9 = arith.constant 0 : index
    %c0_10 = arith.constant 0 : index
    %c0_11 = arith.constant 0 : index
    %6 = vector.load %arg5[%c0_9, %c0_10, %c0_11] : memref<1x8x128xf32, #tpu.memory_space<vmem>>, vector<1x8x128xf32>
    %7 = vector.shape_cast %6 : vector<1x8x128xf32> to vector<8x128xf32>
    %8 = tpu.concatenate %3, %5, %7 in 0 : vector<8x128xf32>, vector<16x128xf32>, vector<8x128xf32> -> vector<32x128xf32>
    %c0_12 = arith.constant 0 : index
    %c0_13 = arith.constant 0 : index
    %9 = vector.load %arg7[%c0_12, %c0_13] : memref<32x1xf32, #tpu.memory_space<vmem>>, vector<32x1xf32>
    %10 = vector.shape_cast %9 : vector<32x1xf32> to vector<32x1xf32>
    %11 = vector.broadcast %10 : vector<32x1xf32> to vector<32x128xf32>
    %cst = arith.constant dense<0.000000e+00> : vector<32x128xf32>
    %12 = tpu.matmul %1, %8, %cst {dimension_numbers = #tpu.dot_dimension_numbers<[1], [0], [0], [1], [0, 0, 1, 1], [], []>} : vector<32x32xf32>, vector<32x128xf32>, vector<32x128xf32> -> vector<32x128xf32>
    %13 = arith.addf %12, %11 : vector<32x128xf32>
    %cst_14 = arith.constant 0.000000e+00 : f32
    %14 = vector.broadcast %cst_14 : f32 to vector<32x128xf32>
    %15 = arith.cmpf ogt, %13, %14 : vector<32x128xf32>
    %16 = vector.broadcast %0 : f32 to vector<32x128xf32>
    %17 = arith.mulf %16, %13 : vector<32x128xf32>
    %18 = arith.select %15, %13, %17 : vector<32x128xi1>, vector<32x128xf32>
    %19 = arith.addf %8, %18 : vector<32x128xf32>
    %cst_15 = arith.constant 0.000000e+00 : f32
    %20 = vector.broadcast %cst_15 : f32 to vector<32x128xf32>
    %21 = arith.maximumf %19, %20 : vector<32x128xf32>
    %cst_16 = arith.constant dense<0.000000e+00> : vector<32x128xf32>
    %22 = tpu.matmul %1, %21, %cst_16 {dimension_numbers = #tpu.dot_dimension_numbers<[1], [0], [0], [1], [0, 0, 1, 1], [], []>} : vector<32x32xf32>, vector<32x128xf32>, vector<32x128xf32> -> vector<32x128xf32>
    %23 = arith.addf %22, %11 : vector<32x128xf32>
    %cst_17 = arith.constant 0.000000e+00 : f32
    %24 = vector.broadcast %cst_17 : f32 to vector<32x128xf32>
    %25 = arith.cmpf ogt, %23, %24 : vector<32x128xf32>
    %26 = vector.broadcast %0 : f32 to vector<32x128xf32>
    %27 = arith.mulf %26, %23 : vector<32x128xf32>
    %28 = arith.select %25, %23, %27 : vector<32x128xi1>, vector<32x128xf32>
    %29 = arith.addf %21, %28 : vector<32x128xf32>
    %cst_18 = arith.constant 0.000000e+00 : f32
    %30 = vector.broadcast %cst_18 : f32 to vector<32x128xf32>
    %31 = arith.maximumf %29, %30 : vector<32x128xf32>
    %32 = vector.extract_strided_slice %31 {offsets = [0, 0], sizes = [8, 128], strides = [1, 1]} : vector<32x128xf32> to vector<8x128xf32>
    %c0_19 = arith.constant 0 : index
    %c0_20 = arith.constant 0 : index
    %c0_21 = arith.constant 0 : index
    %33 = vector.load %arg8[%c0_19, %c0_20, %c0_21] : memref<1x8x128xf32, #tpu.memory_space<vmem>>, vector<1x8x128xf32>
    %34 = vector.shape_cast %33 : vector<1x8x128xf32> to vector<8x128xf32>
    %35 = vector.shape_cast %32 : vector<8x128xf32> to vector<1x8x128xf32>
    tpu.vector_store %arg8[%c0_19, %c0_20, %c0_21], %35 {strides = array<i32>} : memref<1x8x128xf32, #tpu.memory_space<vmem>>, vector<1x8x128xf32>,
    %36 = vector.extract_strided_slice %31 {offsets = [8, 0], sizes = [16, 128], strides = [1, 1]} : vector<32x128xf32> to vector<16x128xf32>
    %c0_22 = arith.constant 0 : index
    %c0_23 = arith.constant 0 : index
    %c0_24 = arith.constant 0 : index
    %37 = vector.load %arg9[%c0_22, %c0_23, %c0_24] : memref<1x16x128xf32, #tpu.memory_space<vmem>>, vector<1x16x128xf32>
    %38 = vector.shape_cast %37 : vector<1x16x128xf32> to vector<16x128xf32>
    %39 = vector.shape_cast %36 : vector<16x128xf32> to vector<1x16x128xf32>
    tpu.vector_store %arg9[%c0_22, %c0_23, %c0_24], %39 {strides = array<i32>} : memref<1x16x128xf32, #tpu.memory_space<vmem>>, vector<1x16x128xf32>,
    %40 = vector.extract_strided_slice %31 {offsets = [24, 0], sizes = [8, 128], strides = [1, 1]} : vector<32x128xf32> to vector<8x128xf32>
    %c0_25 = arith.constant 0 : index
    %c0_26 = arith.constant 0 : index
    %c0_27 = arith.constant 0 : index
    %41 = vector.load %arg10[%c0_25, %c0_26, %c0_27] : memref<1x8x128xf32, #tpu.memory_space<vmem>>, vector<1x8x128xf32>
    %42 = vector.shape_cast %41 : vector<1x8x128xf32> to vector<8x128xf32>
    %43 = vector.shape_cast %40 : vector<8x128xf32> to vector<1x8x128xf32>
    tpu.vector_store %arg10[%c0_25, %c0_26, %c0_27], %43 {strides = array<i32>} : memref<1x8x128xf32, #tpu.memory_space<vmem>>, vector<1x8x128xf32>,
    return
  }
  func.func @transform_0(%arg0: i32, %arg1: i32) -> (i32, i32) {
    %c0_i32 = arith.constant 0 : i32
    %c0_i32_0 = arith.constant 0 : i32
    %c0_i32_1 = arith.constant 0 : i32
    return %c0_i32, %c0_i32_0 : i32, i32
  }
  func.func @transform_1(%arg0: i32, %arg1: i32) -> (i32, i32, i32) {
    %c0_i32 = arith.constant 0 : i32
    %c0_i32_0 = arith.constant 0 : i32
    return %arg0, %c0_i32, %arg1 : i32, i32, i32
  }
  func.func @transform_2(%arg0: i32, %arg1: i32) -> (i32, i32, i32) {
    %c0_i32 = arith.constant 0 : i32
    %c0_i32_0 = arith.constant 0 : i32
    return %arg0, %c0_i32, %arg1 : i32, i32, i32
  }
  func.func @transform_3(%arg0: i32, %arg1: i32) -> (i32, i32, i32) {
    %c0_i32 = arith.constant 0 : i32
    %c0_i32_0 = arith.constant 0 : i32
    return %arg0, %c0_i32, %arg1 : i32, i32, i32
  }
  func.func @transform_4(%arg0: i32, %arg1: i32) -> (i32, i32) {
    %c0_i32 = arith.constant 0 : i32
    %c0_i32_0 = arith.constant 0 : i32
    %c0_i32_1 = arith.constant 0 : i32
    return %c0_i32, %c0_i32_0 : i32, i32
  }
  func.func @transform_5(%arg0: i32, %arg1: i32) -> (i32, i32) {
    %c0_i32 = arith.constant 0 : i32
    %c0_i32_0 = arith.constant 0 : i32
    %c0_i32_1 = arith.constant 0 : i32
    return %c0_i32, %c0_i32_0 : i32, i32
  }
  func.func @transform_6(%arg0: i32, %arg1: i32) -> (i32, i32, i32) {
    %c0_i32 = arith.constant 0 : i32
    %c0_i32_0 = arith.constant 0 : i32
    return %arg0, %c0_i32, %arg1 : i32, i32, i32
  }
  func.func @transform_7(%arg0: i32, %arg1: i32) -> (i32, i32, i32) {
    %c0_i32 = arith.constant 0 : i32
    %c0_i32_0 = arith.constant 0 : i32
    return %arg0, %c0_i32, %arg1 : i32, i32, i32
  }
  func.func @transform_8(%arg0: i32, %arg1: i32) -> (i32, i32, i32) {
    %c0_i32 = arith.constant 0 : i32
    %c0_i32_0 = arith.constant 0 : i32
    return %arg0, %c0_i32, %arg1 : i32, i32, i32
  }
}

</mosaic_0001>

<bundles_post_ra>
// kernel: tpu_custom_call.1
= control target key start
LH: loop header
LB: loop body
LE: loop exit
PB: predicated region body
PF: predicated region fallthrough
CT: control target
= control target key end

     0   :  { %s1829_s0 = inlined_call_operand.<no memory space> [shape: f32[1,1], index: 0, kind: input, shape index: {}]   ;;  %s1830_s1 = inlined_call_operand.vmem [shape: f32[2,8,256], index: 1, kind: input, shape index: {}]   ;;  %s1831_s2 = inlined_call_operand.hbm [shape: f32[2,16,256], index: 2, kind: input, shape index: {}]   ;;  %s1832_s3 = inlined_call_operand.hbm [shape: f32[2,8,256], index: 3, kind: input, shape index: {}]   ;;  %s1833_s4 = inlined_call_operand.hbm [shape: f32[32,32], index: 4, kind: input, shape index: {}]   ;;  %s1834_s5 = inlined_call_operand.vmem [shape: f32[32,1], index: 5, kind: input, shape index: {}]   ;;  %s1835_s6 = inlined_call_operand.hbm [shape: f32[2,8,256], index: 6, kind: output, shape index: {0}]   ;;  %s1836_s7 = inlined_call_operand.hbm [shape: f32[2,16,256], index: 7, kind: output, shape index: {1}]   ;;  %s1837_s8 = inlined_call_operand.hbm [shape: f32[2,8,256], index: 8, kind: output, shape index: {2}]  }
   0x1   :  { %1860 = sst [smem:[#allocation26_spill]] %s1830_s1 }
   0x2   :  { %1861 = sst [smem:[#allocation27_spill]] %s1831_s2 }
   0x3   :  { %1862 = sst [smem:[#allocation28_spill]] %s1833_s4 }
   0x4   :  { %1863 = sst [smem:[#allocation29_spill]] %s1834_s5 }
   0x5   :  { %1864 = sst [smem:[#allocation30_spill]] %s1835_s6 }
   0x6   :  { %1865 = sst [smem:[#allocation31_spill]] %s1836_s7 }
   0x7   :  { %1866 = sst [smem:[#allocation32_spill]] %s1837_s8 }
   0x8   :  { %14 = sst [smem:[#allocation2]] %s1829_s0 }
   0x9   :  { %15 = vsyncpa [#allocation4], 0 }
   0xa   :  { %17 = vsyncpa [#allocation4 + $0x1], 0 }
   0xb   :  { %18 = vsyncpa [#allocation7], 0 }
   0xc   :  { %20 = vsyncpa [#allocation7 + $0x1], 0 }
   0xd   :  { %21 = vsyncpa [#allocation5], 0 }
   0xe   :  { %23 = vsyncpa [#allocation5 + $0x1], 0 }
   0xf   :  { %24 = vsyncpa [#allocation11], 0 }
  0x10   :  { %26 = vsyncpa [#allocation11 + $0x1], 0  ;;  %s1472_s29 = smov 0   ;;  %s1474_s30 = smov 0  }
  0x11   :  { %s1476_s9 = smov 0   ;;  %s1478_s10 = smov 0  }
  0x12   :  { %s1480_s11 = smov 0   ;;  %s1482_s12 = smov 0  }
  0x13   :  { %s1484_s0 = smov 0   ;;  %s1486_s13 = smov 0  }
  0x14 LB: > { %1867 = sst [smem:[#allocation18_spill]] %s1381_s29  ;;  %s1513_s14 = sadd.s32 4294967295, %s1409_s13   ;;  %s1409_s13 = sphi %s1486_s13, %s32_s13   ;;  %s1405_s0 = sphi %s1484_s0, %s1913_s0   ;;  %s1401_s12 = sphi %s1482_s12, %s1912_s12   ;;  %s1397_s11 = sphi %s1480_s11, %s1911_s11   ;;  %s1393_s10 = sphi %s1478_s10, %s1910_s10   ;;  %s1389_s9 = sphi %s1476_s9, %s1909_s9   ;;  %s1385_s30 = sphi %s1474_s30, %s1908_s30   ;;  %s1381_s29 = sphi %s1472_s29, %s1907_s29  }
  0x15   : > { %1868 = sst [smem:[#allocation19_spill]] %s1393_s10  ;;  %s1841_s15 = sadd.s32 4294967294, %s1409_s13  }
  0x16   : > { %1869 = sst [smem:[#allocation20_spill]] %s1397_s11  ;;  %p109_p0 = scmp.ne.s32.totalorder %s1389_s9, %s1385_s30 }
  0x17   : > { %1870 = sst [smem:[#allocation21_spill]] %s1513_s14  ;;  %p110_p1 = scmp.eq.s32.totalorder %s1409_s13, 0 }
  0x18   : > { %p115_p2 = scmp.ne.s32.totalorder %s1385_s30, %s1381_s29  ;;  %p116_p3 = scmp.eq.s32.totalorder %s1513_s14, 0 }
  0x19   : > { %p211_p4 = scmp.eq.s32.totalorder %s1513_s14, 3  ;;  %p1524_p5 = por %p110_p1, %p109_p0 }
  0x1a   : > { %p217_p6 = scmp.eq.s32.totalorder %s1841_s15, 3  ;;  %p1532_p7 = por %p116_p3, %p115_p2 }
  0x1b   : > { %p1536_p8 = por %p211_p4, %p109_p0  ;;  %p973_p10 = scmp.ge.s32.totalorder %s1409_s13, 1 }
  0x1c   : > { %s1872_s18 = scalar_select %p1532_p7, 1, 0 }
  0x1d   : > { %s1873_s19 = scalar_select %p1536_p8, 1, 0 }
  0x1e   : > { %p1540_p9 = por %p217_p6, %p115_p2  ;;  %p280_p11 = scmp.lt.s32.totalorder %s1409_s13, 5 }
  0x1f   : > { %1874 = sst [smem:[#allocation22_spill]] %s1873_s19  ;;  %s1411_s22 = smov [#allocation8]  }
  0x20   : > { %s1875_s20 = scalar_select %p1540_p9, 1, 0 }
  0x21   : > { %p1546_p12 = pnand %p973_p10, %p280_p11  ;;  %s295_s23 = sshll.u32 %s1411_s22, 4  ;;  %s296_s23 = int_to_ptr.vmem [resolvable:$true] %s295_s23 }
  0x22   : > { %1876 = sst [smem:[#allocation23_spill]] %s1875_s20  ;;  %p1090_p0 = scmp.lt.s32.totalorder %s1409_s13, 4 }
  0x23   : > { %s1877_s21 = scalar_select %p1546_p12, 1, 0 }
  0x24   : > { %p1068_p13 = pneg %p1546_p12  ;;  %p1561_p2 = pnand %p1090_p0, %p1524_p5 }
  0x25   : > { %s1178_s26 = scalar_lea.vmem %s296_s23, 512  ;;  %p1186_p9 = scmp.lt.s32.totalorder %s296_s23, %s296_s23 }
  0x26   : > { %p1555_p1 = pnand %p1068_p13, %p116_p3  ;;  %p1179_p6 = scmp.ne.s32.totalorder %s296_s23, %s1178_s26 }
  0x27   : > { %p1187_p8 = scmp.lt.s32.totalorder %s1178_s26, %s1178_s26 }
  0x28   : > { %p1169_p4 = pneg %p1555_p1 }
  0x29   : > { %p1188_p7 = por %p1187_p8, %p1186_p9 }
  0x2a   : > { %p1181_p10 = pnand %p1179_p6, %p1169_p4 }
  0x2c   : > { %p1182_p11 = pneg %p1181_p10 }
  0x2e   : > { %p1189_p12 = pnand %p1188_p7, %p1182_p11 }
  0x30   : > { %1192 = shalt.err (!%p1189_p12)
}
  0x31   : > { %s1844_s27 = smov 128   ;;  %s1845_s28 = smov 8  }
  0x32   : > { %s1880_s4 = sld [smem:[#allocation28_spill]]  ;;  %s41_s26 = sadd.s32 1, %s1401_s12 }
  0x33   : > { %p42_p5 = scmp.ge.s32.totalorder %s41_s26, 2  ;;  %s44_s15 = sadd.s32 1, %s1405_s0 }
  0x34   : > { %s1578_s16 = sand.u32 1, %s1389_s9   ;;  %s977_s20 = sshll.u32 %s1405_s0, 2 }
  0x35   : > { %s1915_s26 = smov (%p42_p5, %s41_s26), 0  ;;  %s1917_s15 = smov (!%p42_p5, %s44_s15), %s1405_s0 }
  0x36   : > { %1881 = sst [smem:[#allocation24_spill]] %s1915_s26  ;;  %s98_s24 = ssub.s32 %s1401_s12, %s1915_s26 }
  0x37   : > { %p46_p7 = scmp.ge.s32.totalorder %s1917_s15, 2  ;;  %s976_s29 = sshll.u32 %s1578_s16, 4 }
  0x38   : > { %1071 = dma.hbm_to_vmem [thread:$0]  (!%p1555_p1), %s1880_s4, 512, %s296_s23, [#allocation7], %s1844_s27, %s1844_s27, %s1845_s28  }
  0x39   : > { %s332_s17 = sadd.s32 %s1401_s12, %s977_s20  ;;  %s1919_s15 = smov (%p46_p7, %s1917_s15), 0 }
  0x3a   : > { %1882 = sst [smem:[#allocation25_spill]] %s1919_s15  ;;  %s978_s23 = sshll.u32 %s332_s17, 7 }
  0x3b   : > { %s327_s22 = scalar_lea.vmem [#allocation3], %s976_s29  ;;  %s97_s28 = ssub.s32 %s1405_s0, %s1919_s15 }
  0x3c   : > { %s335_s27 = sshll.u32 %s327_s22, 4  ;;  %s1883_s2 = sld [smem:[#allocation27_spill]]  ;;  %s336_s27 = int_to_ptr.vmem [resolvable:$true] %s335_s27 }
  0x3d   : > { %s99_s6 = sor.u32 %s98_s24, %s97_s28  ;;  %s324_s19 = scalar_lea.sflag [#allocation4], %s1578_s16 }
  0x3e   : > { %p100_p8 = scmp.eq.s32.totalorder %s99_s6, 0  ;;  %p1195_p9 = pneg %p1561_p2 }
  0x3f   : > { %s1206_s26 = scalar_lea.vmem %s336_s27, 256  ;;  %s1414_s20 = smov [#allocation3]  }
  0x40   : > { %p1207_p12 = scmp.ne.s32.totalorder %s336_s27, %s1206_s26  ;;  %s1211_s29 = sshll.u32 %s1414_s20, 4  ;;  %s1212_s29 = int_to_ptr.vmem [resolvable:$false] %s1211_s29 }
  0x41   : > { %s1213_s17 = scalar_lea.vmem %s1212_s29, 512  ;;  %p1214_p1 = scmp.lt.s32.totalorder %s336_s27, %s1212_s29 }
  0x42   : > { %s334_s7 = scalar_lea.hbm %s1883_s2, %s978_s23  ;;  %p1209_p13 = pnand %p1207_p12, %p1195_p9 }
  0x43   : > { %p1215_p4 = scmp.lt.s32.totalorder %s1213_s17, %s1206_s26 }
  0x44   : > { %p1210_p0 = pneg %p1209_p13 }
  0x45   : > { %p1216_p6 = por %p1215_p4, %p1214_p1 }
  0x47   : > { %p1217_p10 = pnand %p1216_p6, %p1210_p0 }
  0x49   : > { %1220 = shalt.err (!%p1217_p10)
}
  0x4a   : > { %s1415_s4 = smov 256   ;;  %s1884_s8 = smov 8  }
  0x4b   : > { %s1885_s28 = smov 128   ;;  %s1886_s24 = sadd.s32 1, %s1389_s9 }
  0x4c   : > { %1075 = dma.hbm_to_vmem [thread:$0]  (!%p1561_p2), %s334_s7, 256, %s336_s27, %s324_s19, %s1415_s4, %s1885_s28, %s1884_s8  }
  0x4d   : > { %s1609_s23 = scalar_select %p100_p8, %s1389_s9, %s1886_s24  }
  0x4e   : > { %s345_s26 = sand.u32 1, %s1409_s13   ;;  %s979_s22 = sshll.u32 %s1578_s16, 3 }
  0x4f   : > { %s980_s20 = sshll.u32 %s1405_s0, 1  ;;  %s349_s29 = scalar_lea.vmem [#allocation6], %s979_s22 }
  0x50   : > { %s358_s17 = sshll.u32 %s349_s29, 4  ;;  %s354_s2 = sadd.s32 %s1401_s12, %s980_s20  ;;  %s359_s17 = int_to_ptr.vmem [resolvable:$true] %s358_s17 }
  0x51   : > { %s981_s15 = sshll.u32 %s354_s2, 7  ;;  %s346_s11 = scalar_lea.sflag [#allocation7], %s345_s26 }
  0x52   : > { %s356_s10 = scalar_lea.hbm %s1832_s3, %s981_s15  ;;  %s1234_s14 = scalar_lea.vmem %s359_s17, 128 }
  0x53   : > { %p1235_p11 = scmp.ne.s32.totalorder %s359_s17, %s1234_s14  ;;  %s1416_s6 = smov [#allocation6]  }
  0x54   : > { %s1239_s7 = sshll.u32 %s1416_s6, 4  ;;  %s1240_s7 = int_to_ptr.vmem [resolvable:$false] %s1239_s7 }
  0x55   : > { %p1237_p5 = pnand %p1235_p11, %p1195_p9  ;;  %s1241_s16 = scalar_lea.vmem %s1240_s7, 256 }
  0x56   : > { %p1242_p8 = scmp.lt.s32.totalorder %s359_s17, %s1240_s7  ;;  %p1243_p12 = scmp.lt.s32.totalorder %s1241_s16, %s1234_s14 }
  0x57   : > { %p1238_p7 = pneg %p1237_p5 }
  0x58   : > { %p1244_p13 = por %p1243_p12, %p1242_p8 }
  0x5a   : > { %p1245_p0 = pnand %p1244_p13, %p1238_p7 }
  0x5c   : > { %1248 = shalt.err (!%p1245_p0)
}
  0x5d   : > { %1078 = dma.hbm_to_vmem [thread:$0]  (!%p1561_p2), %s356_s10, 128, %s359_s17, %s346_s11  }
  0x5e   : > { %p1887_p1 = scmp.ne.s32.totalorder %s1877_s21, 0 }
  0x5f   : > { %s1626_s1 = sand.u32 (!%p1887_p1), 1, %s1385_s30   ;;  %p1888_p9 = scmp.ne.s32.totalorder (!%p1887_p1), %s1872_s18, 0 }
  0x60   : > { %367 = sbr.rel (%p1887_p1) target bundleno = 609 (0x261), region = 44  ;;  %s983_s2 = sshll.u32 (!%p1887_p1), %s1626_s1, 4 }
  0x61   : > { %s370_s5 = scalar_lea.sflag (!%p1887_p1), [#allocation4], %s1626_s1  ;;  %s373_s14 = scalar_lea.vmem (!%p1887_p1), [#allocation3], %s983_s2 }
  0x65   : > { %1360 = dma.done.wait (%p1888_p9), %s370_s5, 256  }
  0x66   : > { %1362 = vsyncadd (%p1888_p9), %s370_s5, 4294967040  ;;  %s1889_s10 = sld [smem:[#allocation21_spill]]  ;;  %s1638_s15 = sshll.u32 %s1626_s1, 3 }
  0x67   : > { %s382_s21 = scalar_lea.vmem [#allocation6], %s1638_s15 }
  0x6c   : > { %s1858_s11 = sand.u32 1, %s1889_s10  }
  0x6d   : > { %s379_s19 = scalar_lea.sflag [#allocation7], %s1858_s11 }
  0x6e   : > { %1364 = dma.done.wait (%p1888_p9), %s379_s19, 128  }
  0x6f   : > { %1366 = vsyncadd (%p1888_p9), %s379_s19, 4294967168 }
  0x70   : > { %1368 = dma.done.wait (%p116_p3), [#allocation7], 512  }
  0x71   : > { %1370 = vsyncadd (%p116_p3), [#allocation7], 4294966784  ;;  %s1890_s25 = sld [smem:[#allocation20_spill]]  ;;  %v1417_v0 = vmov 0   ;;  %vm483_vm0 = vcmask 261120   ;;  %v458_v1 = vld [vmem:[%s382_s21] sm:$0xff] }
  0x72   : > { %s1891_s27 = sld [smem:[#allocation19_spill]]  ;;  %1166 = vset.pattern.permute.xlu1 %v1417_v0  ;;  %1165 = vset.pattern.permute.xlu0 %v1417_v0  ;;  %v457_v2 = vld [vmem:[%s373_s14 + $0x8] sm:$0xff]  ;;  %v451_v3 = vld [vmem:[#allocation8] sm:$0xff]  ;;  %v453_v11 = vld [vmem:[#allocation8 + $0x10] sm:$0xff]  ;;  %s1692_s26 = scalar_lea.vmem [#allocation10], %s983_s2 }
  0x73   : > { %1026 = vmatprep.subr.mxu0 %v458_v1  ;;  %s1892_s20 = sld [smem:[#allocation26_spill]]  ;;  %v456_v4 = vld [vmem:[%s373_s14] sm:$0xff]  ;;  %1034 = vmatprep.mubr.msk.f32.mxu0 %vm483_vm0, %v451_v3  ;;  %v452_v10 = vld [vmem:[#allocation8 + $0x8] sm:$0xff]  ;;  %v454_v12 = vld [vmem:[#allocation8 + $0x18] sm:$0xff]  ;;  %s751_s22 = sshll.u32 %s1692_s26, 4  ;;  %s1700_s22 = int_to_ptr.vmem [resolvable:$true] %s751_s22 }
  0x74   : > { %1027 = vmatpush3.msra.mxu0 %v458_v1  ;;  %s1893_s7 = sld [smem:[#allocation29_spill]]  ;;  %1048 = vmatprep.mubr.msk.f32.mxu1 %vm483_vm0, %v451_v3  ;;  %s1418_s16 = smov [#allocation9]  }
  0x75   : > { %1028 = vmatprep.subr.mxu0 %v457_v2  ;;  %s1895_s5 = sld [smem:[#allocation30_spill]]  ;;  %s1253_s11 = sshll.u32 %s1418_s16, 4  ;;  %s1254_s11 = int_to_ptr.vmem [resolvable:$false] %s1253_s11 }
  0x76   : > { %1029 = vmatpush3.msra.mxu0 %v457_v2 }
  0x77   : > { %p442_p2 = scmp.lt.s32.totalorder %s1890_s25, 1  ;;  %1030 = vmatprep.subr.mxu0 %v456_v4 }
  0x78   : > { %p444_p4 = scmp.lt.s32.totalorder %s1891_s27, 1  ;;  %1031 = vmatpush3.msra.mxu0 %v456_v4 }
  0x79   : > { %s443_s4 = scalar_select %p442_p2, %s1890_s25, 1 }
  0x7a   : > { %s445_s8 = scalar_select %p444_p4, %s1891_s27, 1  ;;  %v462_v5 = vld [vmem:[%s1893_s7 + $0x18] sm:$0xff]  ;;  %v460_v6 = vld [vmem:[%s1893_s7 + $0x8] sm:$0xff]  ;;  %v461_v8 = vld [vmem:[%s1893_s7 + $0x10] sm:$0xff] }
  0x7b   : > { %s989_s28 = sshll.u32 %s443_s4, 1  ;;  %480 = vperm.xlu0 %1165, %v462_v5   ;;  %470 = vperm.xlu1 %1166, %v460_v6   ;;  %v459_v9 = vld [vmem:[%s1893_s7] sm:$0xff]  ;;  %s1896_s4 = sld [smem:[#allocation31_spill]] }
  0x7c   : > { %s447_s18 = sadd.s32 %s989_s28, %s445_s8  ;;  %s450_s8 = sld [smem:[#allocation2]] }
  0x7d   : > { %s990_s24 = sshll.u32 %s447_s18, 3  ;;  %s1002_s28 = sshll.u32 %s1890_s25, 1 }
  0x7e   : > { %s449_s29 = scalar_lea.vmem %s1892_s20, %s990_s24  ;;  %s1004_s18 = sshll.u32 %s1890_s25, 2 }
  0x7f   : > { %v455_v7 = vld [vmem:[%s449_s29] sm:$0xff]  ;;  %475 = vperm.xlu0 %1165, %v461_v8   ;;  %465 = vperm.xlu1 %1166, %v459_v9   ;;  %s1688_s24 = sadd.s32 %s1891_s27, %s1002_s28  ;;  %s748_s25 = sadd.s32 %s1891_s27, %s1004_s18 }
  0x80   : > { %1032 = vmatprep.subr.mxu0 %v455_v7  ;;  %s1859_s20 = sshll.u32 %s1688_s24, 7  ;;  %s427_s29 = scalar_lea.vmem [#allocation9], %s1638_s15 }
  0x81   : > { %1033 = vmatpush3.msra.mxu0 %v455_v7  ;;  %s737_s2 = sshll.u32 %s427_s29, 4  ;;  %s1005_s17 = sshll.u32 %s748_s25, 7  ;;  %s1711_s2 = int_to_ptr.vmem [resolvable:$true] %s737_s2 }
  0x82   : > { %1035 = vmatmul.mubr.msk.f32.vlgmr.msra.gmra.mxu0 %vm483_vm0, %v452_v10  ;;  %v1675_v18 = vstv %s450_s8  ;;  %s1894_s27 = sld [smem:[#allocation22_spill]]  ;;  %s1709_s19 = scalar_lea.hbm %s1895_s5, %s1859_s20 }
  0x83   : > { %1037 = vmatprep.mubr.msk.f32.mxu0 %vm483_vm0, %v453_v11  ;;  %s1716_s8 = scalar_lea.hbm %s1896_s4, %s1005_s17  ;;  %s441_s28 = scalar_lea.vmem [#allocation12], %s1638_s15 }
  0x84   : > { %s1719_s18 = sshll.u32 %s441_s28, 4  ;;  %s712_s25 = scalar_lea.sflag [#allocation5], %s1626_s1  ;;  %s1750_s18 = int_to_ptr.vmem [resolvable:$true] %s1719_s18 }
  0x85   : > { %s1249_s6 = scalar_lea.vmem %s1711_s2, 128  ;;  %s1255_s20 = scalar_lea.vmem %s1254_s11, 256 }
  0x86   : > { %1038 = vmatmul.mubr.msk.f32.gmra.mxu0 %vm483_vm0, %v454_v12  ;;  %p1250_p3 = scmp.ne.s32.totalorder %s1711_s2, %s1249_s6  ;;  %p1256_p5 = scmp.lt.s32.totalorder %s1711_s2, %s1254_s11 }
  0x87   : > { %p1257_p7 = scmp.lt.s32.totalorder %s1255_s20, %s1249_s6 }
  0x88   : > { %p1897_p6 = scmp.ne.s32.totalorder %s1894_s27, 0 }
  0x89   : > { %p1258_p8 = por %p1257_p7, %p1256_p5 }
  0x8a   : > { %p1251_p10 = pnand %p1250_p3, %p1897_p6 }
  0x8c   : > { %p1252_p11 = pneg %p1251_p10 }
  0x8e   : > { %p1259_p12 = pnand %p1258_p8, %p1252_p11 }
  0xf6   : > { %v471_v13 = vpop.permute.xlu1 %470  ;;  %v481_v14 = vpop.permute.xlu0 %480 }
  0xfa   : > { %v466_v16 = vpop.permute.xlu1 %465  ;;  %v476_v24 = vpop.permute.xlu0 %475 }
 0x142   : > { %v1036_v15 = vpop.f32.mrf.mxu0 }
 0x143   : > { %v568_v17 = vadd.f32 %v1036_v15, %v471_v13 }
 0x144   : > { %v562_v19 = vpop.f32.mrf.mxu0 }
 0x145   : > { %v563_v20 = vadd.f32 %v562_v19, %v466_v16  ;;  %v587_v22 = vmul.f32 %v1675_v18, %v568_v17  ;;  %vm582_vm1 = vcmp.gt.f32.partialorder %v568_v17, 0.0 }
 0x146   : > { %v1039_v21 = vpop.f32.mrf.mxu0 }
 0x147   : > { %v578_v23 = vadd.f32 %v1039_v21, %v481_v14  ;;  %v586_v26 = vmul.f32 %v1675_v18, %v563_v20  ;;  %vm581_vm3 = vcmp.gt.f32.partialorder %v563_v20, 0.0  ;;  %v591_v29 = vsel %vm582_vm1, %v568_v17, %v587_v22 }
 0x148   : > { %v572_v25 = vpop.f32.mrf.mxu0  ;;  %v595_v37 = vadd.f32 %v591_v29, %v456_v4 }
 0x149   : > { %vm584_vm2 = vcmp.gt.f32.partialorder %v578_v23, 0.0  ;;  %v589_v27 = vmul.f32 %v1675_v18, %v578_v23  ;;  %v573_v28 = vadd.f32 %v572_v25, %v476_v24  ;;  %v590_v33 = vsel %vm581_vm3, %v563_v20, %v586_v26 }
 0x14a   : > { %v594_v39 = vadd.f32 %v590_v33, %v455_v7  ;;  %v599_v40 = vmax.f32 %v595_v37, 0.0 }
 0x14b   : > { %v593_v30 = vsel %vm584_vm2, %v578_v23, %v589_v27  ;;  %vm583_vm4 = vcmp.gt.f32.partialorder %v573_v28, 0.0  ;;  %v588_v31 = vmul.f32 %v1675_v18, %v573_v28 }
 0x14c   : > { %v597_v32 = vadd.f32 %v593_v30, %v458_v1  ;;  %v598_v41 = vmax.f32 %v594_v39, 0.0 }
 0x14d   : > { %v592_v34 = vsel %vm583_vm4, %v573_v28, %v588_v31 }
 0x14e   : > { %v601_v35 = vmax.f32 %v597_v32, 0.0  ;;  %v596_v36 = vadd.f32 %v592_v34, %v457_v2 }
 0x150   : > { %1040 = vmatprep.subr.mxu1 %v601_v35  ;;  %v600_v38 = vmax.f32 %v596_v36, 0.0 }
 0x151   : > { %1041 = vmatpush3.msra.mxu1 %v601_v35 }
 0x152   : > { %1042 = vmatprep.subr.mxu1 %v600_v38 }
 0x153   : > { %1043 = vmatpush3.msra.mxu1 %v600_v38 }
 0x154   : > { %1044 = vmatprep.subr.mxu1 %v599_v40 }
 0x155   : > { %1045 = vmatpush3.msra.mxu1 %v599_v40 }
 0x156   : > { %1046 = vmatprep.subr.mxu1 %v598_v41 }
 0x157   : > { %1047 = vmatpush3.msra.mxu1 %v598_v41 }
 0x158   : > { %1049 = vmatmul.mubr.msk.f32.vlgmr.msra.gmra.mxu1 %vm483_vm0, %v452_v10 }
 0x159   : > { %1051 = vmatprep.mubr.msk.f32.mxu1 %vm483_vm0, %v453_v11 }
 0x15c   : > { %1052 = vmatmul.mubr.msk.f32.gmra.mxu1 %vm483_vm0, %v454_v12 }
 0x218   : > { %v1050_v42 = vpop.f32.mrf.mxu1 }
 0x219   : > { %v674_v43 = vadd.f32 %v1050_v42, %v471_v13 }
 0x21a   : > { %v668_v44 = vpop.f32.mrf.mxu1 }
 0x21b   : > { %vm688_vm5 = vcmp.gt.f32.partialorder %v674_v43, 0.0  ;;  %v692_v45 = vmul.f32 %v674_v43, %v1675_v18  ;;  %v669_v46 = vadd.f32 %v668_v44, %v466_v16 }
 0x21c   : > { %v1053_v47 = vpop.f32.mrf.mxu1 }
 0x21d   : > { %v696_v48 = vsel %vm688_vm5, %v674_v43, %v692_v45  ;;  %vm687_vm6 = vcmp.gt.f32.partialorder %v669_v46, 0.0  ;;  %v691_v49 = vmul.f32 %v669_v46, %v1675_v18  ;;  %v684_v50 = vadd.f32 %v1053_v47, %v481_v14 }
 0x21e   : > { %v700_v51 = vadd.f32 %v696_v48, %v599_v40  ;;  %v678_v52 = vpop.f32.mrf.mxu1 }
 0x21f   : > { %v695_v53 = vsel %vm687_vm6, %v669_v46, %v691_v49  ;;  %vm690_vm7 = vcmp.gt.f32.partialorder %v684_v50, 0.0  ;;  %v694_v54 = vmul.f32 %v684_v50, %v1675_v18  ;;  %v679_v55 = vadd.f32 %v678_v52, %v476_v24 }
 0x220   : > { %v704_v56 = vmax.f32 %v700_v51, 0.0  ;;  %v699_v57 = vadd.f32 %v695_v53, %v598_v41 }
 0x221   : > { %v698_v58 = vsel %vm690_vm7, %v684_v50, %v694_v54  ;;  %vm689_vm8 = vcmp.gt.f32.partialorder %v679_v55, 0.0  ;;  %v693_v59 = vmul.f32 %v679_v55, %v1675_v18 }
 0x222   : > { %708 = vst [vmem:[%s1692_s26] sm:$0xff] %v704_v56  ;;  %v703_v60 = vmax.f32 %v699_v57, 0.0  ;;  %v702_v61 = vadd.f32 %v698_v58, %v601_v35 }
 0x223   : > { %v697_v62 = vsel %vm689_vm8, %v679_v55, %v693_v59 }
 0x224   : > { %v706_v63 = vmax.f32 %v702_v61, 0.0  ;;  %v701_v0 = vadd.f32 %v697_v62, %v600_v38  ;;  %707 = vst [vmem:[%s427_s29] sm:$0xff] %v703_v60 }
 0x225   : > { %1262 = shalt.err (!%p1259_p12)
}
 0x226   : > { %s1263_s15 = scalar_lea.hbm %s1709_s19, 128  ;;  %s1267_s17 = scalar_lea.hbm %s1895_s5, 512 }
 0x227   : > { %p1264_p13 = scmp.ne.s32.totalorder %s1709_s19, %s1263_s15  ;;  %p1268_p9 = scmp.lt.s32.totalorder %s1709_s19, %s1895_s5 }
 0x228   : > { %p1269_p2 = scmp.lt.s32.totalorder %s1267_s17, %s1263_s15 }
 0x229   : > { %p1265_p0 = pnand %p1264_p13, %p1897_p6 }
 0x22a   : > { %p1270_p4 = por %p1269_p2, %p1268_p9 }
 0x22b   : > { %p1266_p1 = pneg %p1265_p0 }
 0x22d   : > { %p1271_p3 = pnand %p1270_p4, %p1266_p1 }
 0x22f   : > { %1274 = shalt.err (!%p1271_p3)
}
 0x230   : > { %1062 = dma.vmem_to_hbm [thread:$0]  (%p1897_p6), %s1711_s2, 128, %s1709_s19, %s712_s25   ;;  %v705_v1 = vmax.f32 %v701_v0, 0.0  ;;  %710 = vst [vmem:[%s441_s28] sm:$0xff] %v706_v63 }
 0x231   : > { %s1898_s11 = sshll.u32 %s1688_s24, 7  ;;  %s1899_s16 = sld [smem:[#allocation32_spill]] }
 0x232   : > { %709 = vst [vmem:[%s1692_s26 + $0x8] sm:$0xff] %v705_v1  ;;  %s1900_s1 = sand.u32 1, %s1889_s10   ;;  %s1275_s17 = scalar_lea.vmem %s1700_s22, 256 }
 0x233   : > { %s1755_s29 = scalar_lea.sflag [#allocation11], %s1900_s1  ;;  %p1276_p10 = scmp.ne.s32.totalorder %s1700_s22, %s1275_s17 }
 0x234   : > { %s1419_s2 = smov [#allocation10]  }
 0x235   : > { %p1277_p11 = pnand %p1276_p10, %p1897_p6  ;;  %s1279_s19 = sshll.u32 %s1419_s2, 4  ;;  %s1280_s19 = int_to_ptr.vmem [resolvable:$false] %s1279_s19 }
 0x236   : > { %s1281_s24 = scalar_lea.vmem %s1280_s19, 512  ;;  %p1282_p7 = scmp.lt.s32.totalorder %s1700_s22, %s1280_s19 }
 0x237   : > { %s1747_s15 = scalar_lea.hbm %s1899_s16, %s1898_s11  ;;  %p1278_p5 = pneg %p1277_p11 }
 0x238   : > { %p1283_p8 = scmp.lt.s32.totalorder %s1281_s24, %s1275_s17 }
 0x23a   : > { %p1284_p12 = por %p1283_p8, %p1282_p7 }
 0x23c   : > { %p1285_p13 = pnand %p1284_p12, %p1278_p5 }
 0x23e   : > { %1288 = shalt.err (!%p1285_p13)
}
 0x23f   : > { %s1289_s10 = scalar_lea.hbm %s1716_s8, 256  ;;  %s1293_s25 = scalar_lea.hbm %s1896_s4, 1024 }
 0x240   : > { %p1290_p0 = scmp.ne.s32.totalorder %s1716_s8, %s1289_s10  ;;  %p1294_p2 = scmp.lt.s32.totalorder %s1716_s8, %s1896_s4 }
 0x241   : > { %p1295_p4 = scmp.lt.s32.totalorder %s1293_s25, %s1289_s10 }
 0x242   : > { %p1291_p1 = pnand %p1290_p0, %p1897_p6 }
 0x243   : > { %p1296_p3 = por %p1295_p4, %p1294_p2 }
 0x244   : > { %p1292_p9 = pneg %p1291_p1 }
 0x246   : > { %p1297_p10 = pnand %p1296_p3, %p1292_p9 }
 0x248   : > { %1300 = shalt.err (!%p1297_p10)
}
 0x249   : > { %s1420_s11 = smov 128   ;;  %s1421_s20 = smov 256  }
 0x24a   : > { %s1422_s6 = smov 8   ;;  %s1301_s1 = scalar_lea.vmem %s1750_s18, 128 }
 0x24b   : > { %1063 = dma.vmem_to_hbm [thread:$0]  (%p1897_p6), %s1700_s22, 256, %s1716_s8, %s1755_s29, %s1420_s11, %s1421_s20, %s1422_s6  }
 0x24c   : > { %p1302_p11 = scmp.ne.s32.totalorder %s1750_s18, %s1301_s1  ;;  %s1423_s17 = smov [#allocation12]  }
 0x24d   : > { %s1305_s2 = sshll.u32 %s1423_s17, 4  ;;  %s1306_s2 = int_to_ptr.vmem [resolvable:$false] %s1305_s2 }
 0x24e   : > { %p1303_p5 = pnand %p1302_p11, %p1897_p6  ;;  %s1307_s19 = scalar_lea.vmem %s1306_s2, 256 }
 0x24f   : > { %p1308_p8 = scmp.lt.s32.totalorder %s1750_s18, %s1306_s2  ;;  %p1309_p12 = scmp.lt.s32.totalorder %s1307_s19, %s1301_s1 }
 0x250   : > { %p1304_p7 = pneg %p1303_p5 }
 0x251   : > { %p1310_p13 = por %p1309_p12, %p1308_p8 }
 0x253   : > { %p1311_p0 = pnand %p1310_p13, %p1304_p7 }
 0x255   : > { %1314 = shalt.err (!%p1311_p0)
}
 0x256   : > { %s1315_s24 = scalar_lea.hbm %s1747_s15, 128  ;;  %s1319_s10 = scalar_lea.hbm %s1899_s16, 512 }
 0x257   : > { %p1316_p1 = scmp.ne.s32.totalorder %s1747_s15, %s1315_s24  ;;  %p1320_p4 = scmp.lt.s32.totalorder %s1747_s15, %s1899_s16 }
 0x258   : > { %p1321_p3 = scmp.lt.s32.totalorder %s1319_s10, %s1315_s24 }
 0x259   : > { %p1317_p9 = pnand %p1316_p1, %p1897_p6 }
 0x25a   : > { %p1322_p10 = por %p1321_p3, %p1320_p4 }
 0x25b   : > { %p1318_p2 = pneg %p1317_p9 }
 0x25d   : > { %p1323_p11 = pnand %p1322_p10, %p1318_p2 }
 0x25f   : > { %1326 = shalt.err (!%p1323_p11)
}
 0x260   : > { %1064 = dma.vmem_to_hbm [thread:$0]  (%p1897_p6), %s1750_s18, 128, %s1747_s15, %s1755_s29  }
 0x261 PF: > { %s1901_s25 = sld [smem:[#allocation18_spill]]  ;;  %p1092_p5 = scmp.ge.s32.totalorder %s1409_s13, 2 }
 0x262   : > { %s1902_s21 = sld [smem:[#allocation23_spill]] }
 0x267   : > { %s781_s14 = sand.u32 1, %s1901_s25  }
 0x268   : > { %p1903_p7 = scmp.ne.s32.totalorder %s1902_s21, 0  ;;  %s782_s11 = scalar_lea.sflag [#allocation5], %s781_s14 }
 0x26a   : > { %p1080_p8 = pnand %p1092_p5, %p1903_p7 }
 0x26c   : > { %p1081_p12 = pneg %p1080_p8 }
 0x26e   : > { %1372 = dma.done.wait (%p1081_p12), %s782_s11, 128  }
 0x26f   : > { %1374 = vsyncadd (%p1081_p12), %s782_s11, 4294967168  ;;  %s1904_s20 = sadd.s32 4294967294, %s1409_s13  }
 0x270   : > { %s790_s6 = sand.u32 1, %s1904_s20  }
 0x271   : > { %s791_s27 = scalar_lea.sflag [#allocation11], %s790_s6 }
 0x272   : > { %1376 = dma.done.wait (%p1081_p12), %s791_s27, 384  }
 0x273   : > { %1378 = vsyncadd (%p1081_p12), %s791_s27, 4294966912  ;;  %s32_s13 = sadd.s32 1, %s1409_s13   ;;  %s1905_s18 = sld [smem:[#allocation24_spill]] }
 0x274   : > { %p29_p6 = scmp.ge.s32.totalorder %s32_s13, 6   ;;  %s1906_s15 = sld [smem:[#allocation25_spill]] }
 0x275   : > { %s1907_s29 = smov %s1385_s30  ;;  %s1908_s30 = smov %s1389_s9 }
 0x276   : > { %s1909_s9 = smov %s1609_s23  ;;  %s1910_s10 = smov %s1401_s12 }
 0x277   : > { %s1911_s11 = smov %s1405_s0  ;;  %31 = sbr.rel (!%p29_p6) target bundleno = 20 (0x14), region = 141 }
 0x279   : > { %s1912_s12 = smov %s1905_s18 }
 0x27a   : > { %s1913_s0 = smov %s1906_s15 }
 0x27c   :  { %805 = vsyncpa [#allocation4], 1 }
 0x27d   :  { %807 = vsyncpa [#allocation4 + $0x1], 1 }
 0x27e   :  { %808 = vsyncpa [#allocation7], 1 }
 0x27f   :  { %810 = vsyncpa [#allocation7 + $0x1], 1 }
 0x280   :  { %811 = vsyncpa [#allocation5], 1 }
 0x281   :  { %813 = vsyncpa [#allocation5 + $0x1], 1 }
 0x282   :  { %814 = vsyncpa [#allocation11], 1 }
 0x283   :  { %816 = vsyncpa [#allocation11 + $0x1], 1 }

</bundles_post_ra>
